<compile_context>
chip_gen: v5e
topology: v5e:2x2
jax: 0.10.0
libtpu: 0.0.40
codegen_flags: <defaults>
</compile_context>

<pallas_src>
import math

import numpy as np

import jax
import jax.numpy as jnp
from jax.experimental import pallas as pl
from jax.experimental.pallas import tpu as pltpu


def _round_up(v: int, m: int) -> int:
    return ((v + m - 1) // m) * m


# --------------------------------------------------------------------------- #
# Host-side coefficient tables (float64, tiny, static functions of lmax)       #
# --------------------------------------------------------------------------- #
def _sh_indices(lmax: int):
    ls = np.arange(lmax + 1)
    lidx = np.repeat(ls, 2 * ls + 1)
    midx = np.concatenate([np.arange(-l, l + 1) for l in ls])
    return lidx, midx


def _gen_ylm_coeffs(lmax: int):
    """cAm, cBm (lmax, lmax+1); cPi, zpow (lmax+1, lmax+1, lmax//2+1).
    Mirrors schnetpack.nn.so3 RealSphericalHarmonics coefficient generation."""
    cAm = np.zeros((max(lmax, 1), lmax + 1))
    cBm = np.zeros((max(lmax, 1), lmax + 1))
    for m in range(1, lmax + 1):
        for p in range(0, m + 1):
            c = math.comb(m, p)
            cAm[m - 1, p] = c * math.cos(0.5 * math.pi * (m - p))
            cBm[m - 1, p] = c * math.sin(0.5 * math.pi * (m - p))
    # snap cos/sin(k*pi/2) rounding dust to exact zero so the kernel can skip those terms
    cAm[np.abs(cAm) < 1e-12] = 0.0
    cBm[np.abs(cBm) < 1e-12] = 0.0

    K = lmax // 2 + 1
    cPi = np.zeros((lmax + 1, lmax + 1, K))
    zpow = np.zeros((lmax + 1, lmax + 1, K), dtype=np.int64)
    for l in range(lmax + 1):
        for m in range(0, l + 1):
            for k in range(0, (l - m) // 2 + 1):
                c = math.sqrt(math.factorial(l - m) / math.factorial(l + m))
                c *= (-1.0) ** k * 2.0 ** (-l)
                c *= math.comb(l, k) * math.comb(2 * l - 2 * k, l)
                c *= math.factorial(l - 2 * k) / math.factorial(l - 2 * k - m)
                cPi[l, m, k] = c
                zpow[l, m, k] = l - 2 * k - m
    return cAm, cBm, cPi, zpow


def _fold_prefactors(lmax: int, cPi: np.ndarray) -> np.ndarray:
    """Fold sqrt((2l+1)/(2pi)) (and sqrt(0.5) for m == 0) into the Pi coefficients."""
    out = cPi.copy()
    for l in range(lmax + 1):
        out[l] *= math.sqrt((2 * l + 1) / (2.0 * math.pi))
        out[l, 0] *= math.sqrt(0.5)
    return out


# --------------------------------------------------------------------------- #
# Clebsch-Gordan coefficients in the real-SH basis (host side, static)         #
# --------------------------------------------------------------------------- #
def _clebsch_gordan(j1, m1, j2, m2, j3, m3) -> float:
    if m3 != m1 + m2 or not (abs(j1 - j2) <= j3 <= j1 + j2):
        return 0.0
    if abs(m1) > j1 or abs(m2) > j2 or abs(m3) > j3:
        return 0.0
    f = math.factorial
    pref = math.sqrt(
        (2 * j3 + 1)
        * f(j1 + j2 - j3) * f(j1 - j2 + j3) * f(-j1 + j2 + j3)
        / f(j1 + j2 + j3 + 1)
    )
    pref *= math.sqrt(
        f(j1 + m1) * f(j1 - m1) * f(j2 + m2) * f(j2 - m2) * f(j3 + m3) * f(j3 - m3)
    )
    kmin = max(0, j2 - j3 - m1, j1 - j3 + m2)
    kmax = min(j1 + j2 - j3, j1 - m1, j2 + m2)
    s = 0.0
    for k in range(kmin, kmax + 1):
        s += (-1.0) ** k / (
            f(k) * f(j1 + j2 - j3 - k) * f(j1 - m1 - k) * f(j2 + m2 - k)
            * f(j3 - j2 + m1 + k) * f(j3 - j1 - m2 + k)
        )
    return pref * s


def _generate_cg_complex(lmax: int) -> np.ndarray:
    lidx, midx = _sh_indices(lmax)
    n = (lmax + 1) ** 2
    cg = np.zeros((n, n, n))
    for c1 in range(n):
        for c2 in range(n):
            for c3 in range(n):
                l1, m1 = int(lidx[c1]), int(midx[c1])
                l2, m2 = int(lidx[c2]), int(midx[c2])
                l3, m3 = int(lidx[c3]), int(midx[c3])
                if abs(l1 - l2) <= l3 <= min(l1 + l2, lmax):
                    cg[c1, c2, c3] = _clebsch_gordan(l1, m1, l2, m2, l3, m3)
    return cg


def _generate_sh_to_rsh(lmax: int) -> np.ndarray:
    lidx, midx = _sh_indices(lmax)
    l1, l2 = lidx[:, None], lidx[None, :]
    m1, m2 = midx[:, None], midx[None, :]
    U = (
        1.0 * ((m1 == 0) & (m2 == 0))
        + (-1.0) ** np.abs(m1) / math.sqrt(2) * ((m1 == m2) & (m1 > 0))
        + 1.0 / math.sqrt(2) * ((m1 == -m2) & (m2 < 0))
        + (-1.0j) * (-1.0) ** np.abs(m1) / math.sqrt(2) * ((m1 == -m2) & (m1 < 0))
        + 1.0j / math.sqrt(2) * ((m1 == m2) & (m1 < 0))
    ) * (l1 == l2)
    return U.astype(np.complex128)


def _generate_cg_rsh(lmax: int, parity_invariance: bool = True) -> np.ndarray:
    lidx, _ = _sh_indices(lmax)
    cg = _generate_cg_complex(lmax).astype(np.complex128)
    U = _generate_sh_to_rsh(lmax)
    cg_rsh = np.einsum("ijk,mi,nj,ok->mno", cg, U, U, np.conj(U))
    if parity_invariance:
        parity = (-1.0) ** lidx
        pmask = (parity[:, None, None] * parity[None, :, None]) == parity[None, None, :]
        cg_rsh = cg_rsh * pmask
    else:
        lsum = lidx[:, None, None] + lidx[None, :, None] - lidx[None, None, :]
        cg_rsh = cg_rsh * (1.0j) ** lsum
    return np.real(cg_rsh)


def _sparsify_cg(cg: np.ndarray, tol: float = 1e-8):
    idx = np.argwhere(np.abs(cg) > tol)
    i1, i2, io = idx[:, 0], idx[:, 1], idx[:, 2]
    return cg[i1, i2, io], i1, i2, io


# --------------------------------------------------------------------------- #
# Kernel 1: real spherical harmonics, pairs tiled as (rows, 128) vregs          #
# --------------------------------------------------------------------------- #
def _make_rsh_kernel(lmax: int, cAm, cBm, cPiF, zpow):
    """Coefficients compiled in as constants.
    Input block (3, bn_rows, 128), output block (L2, bn_rows, 128)."""

    def kernel(dir_ref, out_ref):
        x = dir_ref[0]                       # (bn_rows, 128) -> full (8,128) vregs
        y = dir_ref[1]
        z = dir_ref[2]

        def tower(v):                        # v^1 .. v^lmax (exponent 0 skipped entirely)
            t = [None, v]
            for _ in range(2, lmax + 1):
                t.append(t[-1] * v)
            return t

        xp, yp, zp = tower(x), tower(y), tower(z)

        def mono_xy(p, q):                   # x^p * y^q with p + q >= 1
            if p == 0:
                return yp[q]
            if q == 0:
                return xp[p]
            return xp[p] * yp[q]

        def axpy(acc, coef, val):            # acc += coef * val, seeding with the first term
            term = val if coef == 1.0 else val * jnp.float32(coef)
            return term if acc is None else acc + term

        # stream in m-major order so A_m / B_m / Pi liveness stays small; each harmonic is
        # written as an unmasked full-tile store as soon as it is computed.
        for m in range(0, lmax + 1):
            A = None
            B = None
            if m >= 1:
                for p in range(0, m + 1):
                    ca = float(cAm[m - 1, p])
                    cb = float(cBm[m - 1, p])
                    if ca != 0.0:
                        A = axpy(A, ca, mono_xy(p, m - p))
                    if cb != 0.0:
                        B = axpy(B, cb, mono_xy(p, m - p))
            for l in range(m, lmax + 1):
                const = 0.0
                Pi = None
                for k in range(0, (l - m) // 2 + 1):
                    c = float(cPiF[l, m, k])
                    e = int(zpow[l, m, k])
                    if c == 0.0:
                        continue
                    if e == 0:
                        const += c
                    else:
                        Pi = axpy(Pi, c, zp[e])
                if Pi is None:
                    Pi = jnp.full(x.shape, jnp.float32(const), jnp.float32)
                elif const != 0.0:
                    Pi = Pi + jnp.float32(const)

                base = l * (l + 1)           # row index of (l, m=0)
                if m == 0:
                    out_ref[base, :, :] = Pi
                else:
                    out_ref[base + m, :, :] = Pi * A
                    out_ref[base - m, :, :] = Pi * B

    return kernel


def real_spherical_harmonics(dir_ij: jax.Array, lmax: int, block_n: int = 4096):
    """dir_ij: (P, 3) unit vectors.  Returns Y of shape (P, (lmax+1)^2), float32.

    Pair axis is padded to a multiple of 1024 and viewed as (rows, 128) so the kernel works
    on full (8,128) vregs and issues only unmasked full-tile stores."""
    P = dir_ij.shape[0]
    L2 = (lmax + 1) ** 2
    assert dir_ij.shape == (P, 3)

    Ppad = _round_up(max(P, 1), 1024)
    rows = Ppad // 128                                     # multiple of 8

    # pick a row-block: multiple of 8, divides rows, close to block_n//128
    target = max(8, min(block_n // 128, rows))
    target -= target % 8
    bn_rows = 8
    for cand in range(target, 7, -8):
        if rows % cand == 0:
            bn_rows = cand
            break

    d = jnp.asarray(dir_ij, jnp.float32)
    if Ppad != P:
        pad = jnp.zeros((Ppad - P, 3), jnp.float32).at[:, 2].set(1.0)  # valid unit vectors
        d = jnp.concatenate([d, pad], axis=0)
    d3 = d.T.reshape(3, rows, 128)                         # pairs -> (sublane, lane) tiles

    cAm, cBm, cPi, zpow = _gen_ylm_coeffs(lmax)
    cPiF = _fold_prefactors(lmax, cPi)
    kernel = _make_rsh_kernel(lmax, cAm, cBm, cPiF, zpow)

    y3 = pl.pallas_call(
        kernel,
        out_shape=jax.ShapeDtypeStruct((L2, rows, 128), jnp.float32),
        grid_spec=pltpu.PrefetchScalarGridSpec(
            num_scalar_prefetch=0,
            grid=(rows // bn_rows,),
            in_specs=[pl.BlockSpec((3, bn_rows, 128), lambda i: (0, i, 0))],
            out_specs=pl.BlockSpec((L2, bn_rows, 128), lambda i: (0, i, 0)),
        ),
        compiler_params=pltpu.CompilerParams(dimension_semantics=("parallel",)),
    )(d3)

    # TODO(synk): this reshape/slice/transpose back to (P, L2) is pure XLA relayout traffic;
    # fusing Y_lm directly into the pair kernel would remove it.
    return y3.reshape(L2, Ppad)[:, :P].T


# --------------------------------------------------------------------------- #
# Kernel 2: fused filternet + x[idx_j] gather + sparse CG tensor product        #
# --------------------------------------------------------------------------- #
def _make_pair_kernel(lmax, n_features, cg_sparse, idx_in_1, idx_in_2, idx_out, widx):
    L2 = (lmax + 1) ** 2
    F = n_features

    # group the (static) sparse CG terms by (output (l,m) channel, radial-filter degree)
    groups = {}
    used_i1 = set()
    for c in range(len(cg_sparse)):
        key = (int(idx_out[c]), int(widx[c]))
        groups.setdefault(key, []).append(
            (int(idx_in_1[c]), int(idx_in_2[c]), float(cg_sparse[c])))
        used_i1.add(int(idx_in_1[c]))
    used_i1 = sorted(used_i1)

    def kernel(idx_ref, rad_ref, cut_ref, y_ref, x_ref, w_ref, b_ref,
               out_ref, xj_sc, w_sc, ybc_sc):
        tp = rad_ref.shape[0]
        pair_base = pl.program_id(0) * tp

        # (1) in-kernel neighbour gather: x stays resident in VMEM, idx_j lives in SMEM,
        #     rows are copied into a VMEM scratch (no HBM materialisation of xj).
        @pl.loop(0, tp)
        def _gather(p):
            a = idx_ref[pair_base + p]
            xj_sc[p, :, :] = x_ref[a, :, :]

        # (2) radial filternet on the MXU; cutoff folded in; parked in VMEM scratch so the
        #     (lmax+1) per-degree filters do not camp in vregs at tp=128.
        filt = jnp.dot(rad_ref[...], w_ref[...], preferred_element_type=jnp.float32)
        filt = filt + b_ref[...]
        w_sc[...] = filt * cut_ref[...]                    # (tp, (lmax+1)*F)

        # (3) hoisted per-harmonic lane broadcasts of Y (once per block, into VMEM scratch)
        yij = y_ref[...]                                   # (tp, L2)
        for i1 in used_i1:
            ybc_sc[i1, :, :] = jnp.broadcast_to(yij[:, i1:i1 + 1], (tp, F))

        # (4) sparse Clebsch-Gordan tensor product; one unmasked full-tile store per
        #     output channel s (output layout is (L2, tp, F)).
        for s in range(L2):
            acc = None
            for l in range(lmax + 1):
                terms = groups.get((s, l))
                if not terms:
                    continue
                t = None
                for (i1, i2, coef) in terms:
                    contrib = (ybc_sc[i1, :, :] * jnp.float32(coef)) * xj_sc[:, i2, :]
                    t = contrib if t is None else t + contrib
                wl = w_sc[:, l * F:(l + 1) * F]
                acc = t * wl if acc is None else acc + t * wl
            if acc is None:
                acc = jnp.zeros((tp, F), jnp.float32)
            out_ref[s, :, :] = acc

    return kernel


def _pair_vmem_estimate(n_atoms, L2, F, R, tp, lmax):
    L2p = _round_up(L2, 8)
    Fp = _round_up(F, 128)
    LF = _round_up((lmax + 1) * F, 128)
    x_bytes = n_atoms * L2p * Fp * 4
    in_blocks = tp * _round_up(R, 128) * 4 + tp * 128 * 4 + tp * _round_up(L2, 128) * 4
    params = _round_up(R, 8) * LF * 4 + 8 * LF * 4
    out_block = L2 * tp * Fp * 4
    scratch = tp * L2p * Fp * 4 + tp * LF * 4 + L2 * tp * Fp * 4
    return 2 * (x_bytes + in_blocks + params + out_block) + scratch


def _pad_rows(a: jax.Array, n_rows: int, fill=0) -> jax.Array:
    if a.shape[0] == n_rows:
        return a
    pad = jnp.full((n_rows - a.shape[0],) + a.shape[1:], fill, a.dtype)
    return jnp.concatenate([a, pad], axis=0)


# --------------------------------------------------------------------------- #
# SO3Convolution forward pass                                                   #
# --------------------------------------------------------------------------- #
def so3_convolution(x, radial_ij, dir_ij, cutoff_ij, idx_i, idx_j, weight, bias, lmax,
                    *, pair_block: int = 128, rsh_block: int = 4096):
    """Forward pass of schnetpack's SO3Convolution.

    x:          (n_atoms, (lmax+1)^2, n_atom_basis)   SO3 features
    radial_ij:  (P, n_radial)                         radial basis per pair
    dir_ij:     (P, 3)                                unit direction i->j (Y_lm computed here)
    cutoff_ij:  (P, 1)
    idx_i/j:    (P,) int32                            atom indices per pair
    weight:     ((lmax+1)*n_atom_basis, n_radial)     filternet Dense weight (torch layout)
    bias:       ((lmax+1)*n_atom_basis,)              filternet Dense bias
    """
    x = jnp.asarray(x, jnp.float32)
    n_atoms, L2, F = x.shape
    P, R = radial_ij.shape
    assert L2 == (lmax + 1) ** 2
    tp = int(pair_block)
    assert tp % 8 == 0

    # pad the pair axis; padded pairs get cutoff 0 (=> exactly zero contribution) and
    # valid dummy indices, so no final slicing is needed.
    Ppad = _round_up(max(P, 1), tp)
    rad_p = _pad_rows(jnp.asarray(radial_ij, jnp.float32), Ppad)
    cut_p = _pad_rows(jnp.asarray(cutoff_ij, jnp.float32), Ppad)
    dir_p = jnp.asarray(dir_ij, jnp.float32)
    if Ppad != P:
        dpad = jnp.zeros((Ppad - P, 3), jnp.float32).at[:, 2].set(1.0)
        dir_p = jnp.concatenate([dir_p, dpad], axis=0)
    idx_j_p = _pad_rows(jnp.asarray(idx_j, jnp.int32), Ppad)
    idx_i_p = _pad_rows(jnp.asarray(idx_i, jnp.int32), Ppad)

    # 1) real spherical harmonics of the (padded) pair directions (Pallas kernel 1)
    Y_p = real_spherical_harmonics(dir_p, lmax, block_n=rsh_block)          # (Ppad, L2)

    # 2) static Clebsch-Gordan sparsity (mirrors generate_clebsch_gordan_rsh + sparsify)
    cg_sparse, i1, i2, io = _sparsify_cg(_generate_cg_rsh(lmax))
    lidx, _ = _sh_indices(lmax)
    widx = lidx[i1]

    # 3) filternet parameters in (R, (lmax+1)*F) layout for a single MXU dot in the kernel
    W_all = jnp.asarray(weight, jnp.float32).T                              # (R, (lmax+1)*F)
    b_all = jnp.asarray(bias, jnp.float32)[None, :]                         # (1, (lmax+1)*F)

    # 4) fused gather + filternet + CG tensor product (Pallas kernel 2)
    kernel = _make_pair_kernel(lmax, F, cg_sparse, i1, i2, io, widx)
    # TODO(synk): for systems where x does not fit VMEM (v7x: 64 MiB total), fall back to a
    # manual double-buffered DMA gather (memory_space=pl.ANY + make_async_copy).
    est = _pair_vmem_estimate(n_atoms, L2, F, R, tp, lmax)
    vmem_limit = int(min(max(est + (16 << 20), 32 << 20), 100 << 20))

    yT = pl.pallas_call(
        kernel,
        out_shape=jax.ShapeDtypeStruct((L2, Ppad, F), jnp.float32),
        grid_spec=pltpu.PrefetchScalarGridSpec(
            num_scalar_prefetch=1,                          # idx_j -> SMEM
            grid=(Ppad // tp,),
            in_specs=[
                pl.BlockSpec((tp, R), lambda i, idxj: (i, 0)),
                pl.BlockSpec((tp, 1), lambda i, idxj: (i, 0)),
                pl.BlockSpec((tp, L2), lambda i, idxj: (i, 0)),
                pl.BlockSpec((n_atoms, L2, F), lambda i, idxj: (0, 0, 0)),   # x resident
                pl.BlockSpec((R, (lmax + 1) * F), lambda i, idxj: (0, 0)),
                pl.BlockSpec((1, (lmax + 1) * F), lambda i, idxj: (0, 0)),
            ],
            out_specs=pl.BlockSpec((L2, tp, F), lambda i, idxj: (0, i, 0)),
            scratch_shapes=[
                pltpu.VMEM((tp, L2, F), jnp.float32),             # gathered xj
                pltpu.VMEM((tp, (lmax + 1) * F), jnp.float32),    # radial filters * cutoff
                pltpu.VMEM((L2, tp, F), jnp.float32),             # broadcast Y columns
            ],
        ),
        compiler_params=pltpu.CompilerParams(
            dimension_semantics=("parallel",),
            vmem_limit_bytes=vmem_limit),
    )(idx_j_p, rad_p, cut_p, Y_p, x, W_all, b_all)                          # (L2, Ppad, F)

    # 5) aggregate pair messages onto atom i.
    # TODO(synk): the data-dependent scatter-add over idx_i stays in XLA; sorting pairs by
    # idx_i and accumulating segment sums across grid steps inside the pair kernel would
    # remove this extra HBM round trip.
    y_by_atom = jnp.zeros((L2, n_atoms, F), jnp.float32).at[:, idx_i_p].add(yT)
    return jnp.transpose(y_by_atom, (1, 0, 2))                              # (n_atoms, L2, F)


# --------------------------------------------------------------------------- #
# NumPy references mirroring the torch forward passes (for validation)          #
# --------------------------------------------------------------------------- #
def _rsh_reference_numpy(directions: np.ndarray, lmax: int) -> np.ndarray:
    d = np.asarray(directions, dtype=np.float64)
    N = d.shape[0]
    cAm, cBm, cPi, zpow = _gen_ylm_coeffs(lmax)

    powers = np.zeros((max(lmax, 1), lmax + 1, 2))
    for m in range(1, lmax + 1):
        for p in range(0, m + 1):
            powers[m - 1, p, 0] = p
            powers[m - 1, p, 1] = m - p

    Rs = np.broadcast_to(d[:, None, None, :2], (N, max(lmax, 1), lmax + 1, 2)).copy()
    pows = np.broadcast_to(powers[None], Rs.shape)
    Rs = np.where(pows == 0, 1.0, Rs)
    mono = np.prod(Rs ** pows, axis=-1)
    Am = np.sum(mono * cAm[None], axis=2)[:, :lmax]
    Bm = np.sum(mono * cBm[None], axis=2)[:, :lmax]
    ABm = np.concatenate([Bm[:, ::-1], math.sqrt(0.5) * np.ones((N, 1)), Am], axis=1)

    lidx, midx = _sh_indices(lmax)
    ABm = ABm[:, midx + lmax]

    zb = np.broadcast_to(d[:, 2, None, None, None], (N,) + cPi.shape)
    zpb = np.broadcast_to(zpow[None].astype(np.float64), zb.shape)
    zb = np.where(zpb == 0, 1.0, zb)
    Pi = np.sum((zb ** zpb) * cPi[None], axis=-1)
    Pi_lm = Pi[:, lidx, np.abs(midx)]
    return np.sqrt((2 * lidx + 1) / (2.0 * math.pi)) * Pi_lm * ABm


def _so3conv_reference(x, radial, dirs, cutoff, idx_i, idx_j, weight, bias, lmax,
                       cg_sparse, idx_in_1, idx_in_2, idx_out, widx):
    x = np.asarray(x, np.float64)
    radial = np.asarray(radial, np.float64)
    cutoff = np.asarray(cutoff, np.float64)
    weight = np.asarray(weight, np.float64)
    bias = np.asarray(bias, np.float64)
    idx_i = np.asarray(idx_i)
    idx_j = np.asarray(idx_j)

    n_atoms, L2, F = x.shape
    P = radial.shape[0]

    Y = _rsh_reference_numpy(dirs, lmax)                          # (P, L2)
    filt = radial @ weight.T + bias                               # (P, (lmax+1)*F)
    Wij = (filt * cutoff).reshape(P, lmax + 1, F)[:, widx]        # (P, ncg, F)
    xj = x[idx_j[:, None], idx_in_2[None, :], :]                  # (P, ncg, F)
    v = Wij * Y[:, idx_in_1, None] * cg_sparse[None, :, None] * xj

    yij = np.zeros((P, L2, F))
    np.add.at(yij, (np.arange(P)[:, None], idx_out[None, :]), v)  # scatter over (l,m)
    y = np.zeros((n_atoms, L2, F))
    np.add.at(y, idx_i, yij)                                      # scatter over atoms
    return y


# --------------------------------------------------------------------------- #
# Demo                                                                          #
# --------------------------------------------------------------------------- #
if __name__ == "__main__":
    lmax = 2
    n_atoms = 8
    n_atom_basis = 128
    n_radial = 16
    n_pairs = 256                    # -> 2 grid steps at pair_block=128 (megacore on v7x)
    L2 = (lmax + 1) ** 2

    key = jax.random.PRNGKey(0)
    k = jax.random.split(key, 8)

    x = jax.random.normal(k[0], (n_atoms, L2, n_atom_basis), dtype=jnp.float32)
    radial_ij = jax.random.normal(k[1], (n_pairs, n_radial), dtype=jnp.float32)
    v = jax.random.normal(k[2], (n_pairs, 3), dtype=jnp.float32)
    dir_ij = v / jnp.linalg.norm(v, axis=-1, keepdims=True)
    cutoff_ij = jax.random.uniform(k[3], (n_pairs, 1), dtype=jnp.float32)
    idx_i = jnp.repeat(jnp.arange(n_atoms, dtype=jnp.int32), n_pairs // n_atoms)
    idx_j = jax.random.randint(k[4], (n_pairs,), 0, n_atoms, dtype=jnp.int32)
    weight = 0.3 * jax.random.normal(
        k[5], ((lmax + 1) * n_atom_basis, n_radial), dtype=jnp.float32)
    bias = 0.1 * jax.random.normal(k[6], ((lmax + 1) * n_atom_basis,), dtype=jnp.float32)

    # run the Pallas-backed forward pass
    y = so3_convolution(x, radial_ij, dir_ij, cutoff_ij, idx_i, idx_j, weight, bias, lmax)
    y = jax.block_until_ready(y)
    assert y.shape == (n_atoms, L2, n_atom_basis)

    # check the spherical-harmonics kernel on its own (including a ragged pair count)
    Yk = jax.block_until_ready(real_spherical_harmonics(dir_ij, lmax))
    np.testing.assert_allclose(
        np.asarray(Yk), _rsh_reference_numpy(np.asarray(dir_ij), lmax), rtol=1e-4, atol=1e-4)
    Yk_odd = jax.block_until_ready(real_spherical_harmonics(dir_ij[:37], lmax))
    np.testing.assert_allclose(
        np.asarray(Yk_odd), _rsh_reference_numpy(np.asarray(dir_ij[:37]), lmax),
        rtol=1e-4, atol=1e-4)

    # check the full convolution against a NumPy mirror of the torch forward pass
    # (loose tolerance: the in-kernel filternet dot runs on the MXU at default precision)
    cg_sparse, i1, i2, io = _sparsify_cg(_generate_cg_rsh(lmax))
    lidx, _ = _sh_indices(lmax)
    widx = lidx[i1]
    ref = _so3conv_reference(
        np.asarray(x), np.asarray(radial_ij), np.asarray(dir_ij), np.asarray(cutoff_ij),
        np.asarray(idx_i), np.asarray(idx_j), np.asarray(weight), np.asarray(bias), lmax,
        cg_sparse, i1, i2, io, widx)
    np.testing.assert_allclose(np.asarray(y), ref, rtol=1e-2, atol=1e-2)

    print("KERNEL_OK")
</pallas_src>

<mosaic_0001>
module attributes {stable_mosaic.version = 11 : i64} {
  func.func @kernel(%arg0: i32, %arg1: memref<3x8x128xf32, #tpu.memory_space<vmem>>, %arg2: memref<9x8x128xf32, #tpu.memory_space<vmem>>) attributes {dimension_semantics = [#tpu.dimension_semantics<parallel>], iteration_bounds = array<i64: 1>, scalar_prefetch = 0 : i64, scratch_operands = 0 : i64, tpu.core_type = #tpu.core_type<tc>, window_params = [{transform_indices = @transform_0, window_bounds = array<i64: 3, 8, 128>}, {transform_indices = @transform_1, window_bounds = array<i64: 9, 8, 128>}]} {
    %c0 = arith.constant 0 : index
    %c0_0 = arith.constant 0 : index
    %c0_1 = arith.constant 0 : index
    %0 = vector.load %arg1[%c0, %c0_0, %c0_1] : memref<3x8x128xf32, #tpu.memory_space<vmem>>, vector<1x8x128xf32>
    %1 = vector.shape_cast %0 : vector<1x8x128xf32> to vector<8x128xf32>
    %c1 = arith.constant 1 : index
    %c0_2 = arith.constant 0 : index
    %c0_3 = arith.constant 0 : index
    %2 = vector.load %arg1[%c1, %c0_2, %c0_3] : memref<3x8x128xf32, #tpu.memory_space<vmem>>, vector<1x8x128xf32>
    %3 = vector.shape_cast %2 : vector<1x8x128xf32> to vector<8x128xf32>
    %c2 = arith.constant 2 : index
    %c0_4 = arith.constant 0 : index
    %c0_5 = arith.constant 0 : index
    %4 = vector.load %arg1[%c2, %c0_4, %c0_5] : memref<3x8x128xf32, #tpu.memory_space<vmem>>, vector<1x8x128xf32>
    %5 = vector.shape_cast %4 : vector<1x8x128xf32> to vector<8x128xf32>
    %6 = arith.mulf %1, %1 : vector<8x128xf32>
    %7 = arith.mulf %3, %3 : vector<8x128xf32>
    %8 = arith.mulf %5, %5 : vector<8x128xf32>
    %cst = arith.constant 0.282094806 : f32
    %9 = vector.broadcast %cst : f32 to vector<8x128xf32>
    %c0_6 = arith.constant 0 : index
    %c0_7 = arith.constant 0 : index
    %c0_8 = arith.constant 0 : index
    %10 = vector.load %arg2[%c0_6, %c0_7, %c0_8] : memref<9x8x128xf32, #tpu.memory_space<vmem>>, vector<1x8x128xf32>
    %11 = vector.shape_cast %10 : vector<1x8x128xf32> to vector<8x128xf32>
    %12 = vector.shape_cast %9 : vector<8x128xf32> to vector<1x8x128xf32>
    tpu.vector_store %arg2[%c0_6, %c0_7, %c0_8], %12 {strides = array<i32>} : memref<9x8x128xf32, #tpu.memory_space<vmem>>, vector<1x8x128xf32>,
    %cst_9 = arith.constant 0.488602519 : f32
    %13 = vector.broadcast %cst_9 : f32 to vector<8x128xf32>
    %14 = arith.mulf %5, %13 : vector<8x128xf32>
    %c2_10 = arith.constant 2 : index
    %c0_11 = arith.constant 0 : index
    %c0_12 = arith.constant 0 : index
    %15 = vector.load %arg2[%c2_10, %c0_11, %c0_12] : memref<9x8x128xf32, #tpu.memory_space<vmem>>, vector<1x8x128xf32>
    %16 = vector.shape_cast %15 : vector<1x8x128xf32> to vector<8x128xf32>
    %17 = vector.shape_cast %14 : vector<8x128xf32> to vector<1x8x128xf32>
    tpu.vector_store %arg2[%c2_10, %c0_11, %c0_12], %17 {strides = array<i32>} : memref<9x8x128xf32, #tpu.memory_space<vmem>>, vector<1x8x128xf32>,
    %cst_13 = arith.constant 0.946174681 : f32
    %18 = vector.broadcast %cst_13 : f32 to vector<8x128xf32>
    %19 = arith.mulf %8, %18 : vector<8x128xf32>
    %cst_14 = arith.constant -0.31539157 : f32
    %20 = vector.broadcast %cst_14 : f32 to vector<8x128xf32>
    %21 = arith.addf %19, %20 : vector<8x128xf32>
    %c6 = arith.constant 6 : index
    %c0_15 = arith.constant 0 : index
    %c0_16 = arith.constant 0 : index
    %22 = vector.load %arg2[%c6, %c0_15, %c0_16] : memref<9x8x128xf32, #tpu.memory_space<vmem>>, vector<1x8x128xf32>
    %23 = vector.shape_cast %22 : vector<1x8x128xf32> to vector<8x128xf32>
    %24 = vector.shape_cast %21 : vector<8x128xf32> to vector<1x8x128xf32>
    tpu.vector_store %arg2[%c6, %c0_15, %c0_16], %24 {strides = array<i32>} : memref<9x8x128xf32, #tpu.memory_space<vmem>>, vector<1x8x128xf32>,
    %cst_17 = arith.constant 0.488602519 : f32
    %25 = vector.broadcast %cst_17 : f32 to vector<8x128xf32>
    %26 = arith.mulf %25, %1 : vector<8x128xf32>
    %c3 = arith.constant 3 : index
    %c0_18 = arith.constant 0 : index
    %c0_19 = arith.constant 0 : index
    %27 = vector.load %arg2[%c3, %c0_18, %c0_19] : memref<9x8x128xf32, #tpu.memory_space<vmem>>, vector<1x8x128xf32>
    %28 = vector.shape_cast %27 : vector<1x8x128xf32> to vector<8x128xf32>
    %29 = vector.shape_cast %26 : vector<8x128xf32> to vector<1x8x128xf32>
    tpu.vector_store %arg2[%c3, %c0_18, %c0_19], %29 {strides = array<i32>} : memref<9x8x128xf32, #tpu.memory_space<vmem>>, vector<1x8x128xf32>,
    %30 = arith.mulf %25, %3 : vector<8x128xf32>
    %c1_20 = arith.constant 1 : index
    %c0_21 = arith.constant 0 : index
    %c0_22 = arith.constant 0 : index
    %31 = vector.load %arg2[%c1_20, %c0_21, %c0_22] : memref<9x8x128xf32, #tpu.memory_space<vmem>>, vector<1x8x128xf32>
    %32 = vector.shape_cast %31 : vector<1x8x128xf32> to vector<8x128xf32>
    %33 = vector.shape_cast %30 : vector<8x128xf32> to vector<1x8x128xf32>
    tpu.vector_store %arg2[%c1_20, %c0_21, %c0_22], %33 {strides = array<i32>} : memref<9x8x128xf32, #tpu.memory_space<vmem>>, vector<1x8x128xf32>,
    %cst_23 = arith.constant 1.09254849 : f32
    %34 = vector.broadcast %cst_23 : f32 to vector<8x128xf32>
    %35 = arith.mulf %5, %34 : vector<8x128xf32>
    %36 = arith.mulf %35, %1 : vector<8x128xf32>
    %c7 = arith.constant 7 : index
    %c0_24 = arith.constant 0 : index
    %c0_25 = arith.constant 0 : index
    %37 = vector.load %arg2[%c7, %c0_24, %c0_25] : memref<9x8x128xf32, #tpu.memory_space<vmem>>, vector<1x8x128xf32>
    %38 = vector.shape_cast %37 : vector<1x8x128xf32> to vector<8x128xf32>
    %39 = vector.shape_cast %36 : vector<8x128xf32> to vector<1x8x128xf32>
    tpu.vector_store %arg2[%c7, %c0_24, %c0_25], %39 {strides = array<i32>} : memref<9x8x128xf32, #tpu.memory_space<vmem>>, vector<1x8x128xf32>,
    %40 = arith.mulf %35, %3 : vector<8x128xf32>
    %c5 = arith.constant 5 : index
    %c0_26 = arith.constant 0 : index
    %c0_27 = arith.constant 0 : index
    %41 = vector.load %arg2[%c5, %c0_26, %c0_27] : memref<9x8x128xf32, #tpu.memory_space<vmem>>, vector<1x8x128xf32>
    %42 = vector.shape_cast %41 : vector<1x8x128xf32> to vector<8x128xf32>
    %43 = vector.shape_cast %40 : vector<8x128xf32> to vector<1x8x128xf32>
    tpu.vector_store %arg2[%c5, %c0_26, %c0_27], %43 {strides = array<i32>} : memref<9x8x128xf32, #tpu.memory_space<vmem>>, vector<1x8x128xf32>,
    %cst_28 = arith.constant -1.000000e+00 : f32
    %44 = vector.broadcast %cst_28 : f32 to vector<8x128xf32>
    %45 = arith.mulf %7, %44 : vector<8x128xf32>
    %46 = arith.mulf %1, %3 : vector<8x128xf32>
    %cst_29 = arith.constant 2.000000e+00 : f32
    %47 = vector.broadcast %cst_29 : f32 to vector<8x128xf32>
    %48 = arith.mulf %46, %47 : vector<8x128xf32>
    %49 = arith.addf %45, %6 : vector<8x128xf32>
    %cst_30 = arith.constant 0.546274245 : f32
    %50 = vector.broadcast %cst_30 : f32 to vector<8x128xf32>
    %51 = arith.mulf %50, %49 : vector<8x128xf32>
    %c8 = arith.constant 8 : index
    %c0_31 = arith.constant 0 : index
    %c0_32 = arith.constant 0 : index
    %52 = vector.load %arg2[%c8, %c0_31, %c0_32] : memref<9x8x128xf32, #tpu.memory_space<vmem>>, vector<1x8x128xf32>
    %53 = vector.shape_cast %52 : vector<1x8x128xf32> to vector<8x128xf32>
    %54 = vector.shape_cast %51 : vector<8x128xf32> to vector<1x8x128xf32>
    tpu.vector_store %arg2[%c8, %c0_31, %c0_32], %54 {strides = array<i32>} : memref<9x8x128xf32, #tpu.memory_space<vmem>>, vector<1x8x128xf32>,
    %55 = arith.mulf %50, %48 : vector<8x128xf32>
    %c4 = arith.constant 4 : index
    %c0_33 = arith.constant 0 : index
    %c0_34 = arith.constant 0 : index
    %56 = vector.load %arg2[%c4, %c0_33, %c0_34] : memref<9x8x128xf32, #tpu.memory_space<vmem>>, vector<1x8x128xf32>
    %57 = vector.shape_cast %56 : vector<1x8x128xf32> to vector<8x128xf32>
    %58 = vector.shape_cast %55 : vector<8x128xf32> to vector<1x8x128xf32>
    tpu.vector_store %arg2[%c4, %c0_33, %c0_34], %58 {strides = array<i32>} : memref<9x8x128xf32, #tpu.memory_space<vmem>>, vector<1x8x128xf32>,
    return
  }
  func.func @transform_0(%arg0: i32) -> (i32, i32, i32) {
    %c0_i32 = arith.constant 0 : i32
    %c0_i32_0 = arith.constant 0 : i32
    %c0_i32_1 = arith.constant 0 : i32
    return %c0_i32, %arg0, %c0_i32_0 : i32, i32, i32
  }
  func.func @transform_1(%arg0: i32) -> (i32, i32, i32) {
    %c0_i32 = arith.constant 0 : i32
    %c0_i32_0 = arith.constant 0 : i32
    %c0_i32_1 = arith.constant 0 : i32
    return %c0_i32, %arg0, %c0_i32_0 : i32, i32, i32
  }
}

</mosaic_0001>

<bundles_post_ra>
// kernel: tpu_custom_call.1
= control target key start
LH: loop header
LB: loop body
LE: loop exit
PB: predicated region body
PF: predicated region fallthrough
CT: control target
= control target key end

     0   :  { %6 = vsyncpa [#allocation3], 0  ;;  %s167_s0 = inlined_call_operand.hbm [shape: f32[3,8,128], index: 0, kind: input, shape index: {}]   ;;  %s168_s1 = inlined_call_operand.hbm [shape: f32[9,8,128], index: 1, kind: output, shape index: {}]  }
   0x1   :  { %7 = vsyncpa [#allocation4], 0  ;;  %s12_s8 = sshll.u32 %s167_s0, 4  ;;  %s140_s9 = smov [#allocation2]   ;;  %s13_s8 = int_to_ptr.hbm [resolvable:$true] %s12_s8 }
   0x2   :  { %s14_s10 = sshll.u32 %s140_s9, 4  ;;  %s141_s11 = smov 128   ;;  %s15_s10 = int_to_ptr.vmem [resolvable:$true] %s14_s10 }
   0x3   :  { %s142_s12 = smov 8  }
   0x4   :  { %20 = dma.hbm_to_vmem [thread:$0]  %s13_s8, 384, %s15_s10, [#allocation3], %s141_s11, %s141_s11, %s142_s12  }
   0x5   :  { %136 = dma.done.wait [#allocation3], 384  }
   0x6   :  { %137 = vsyncadd [#allocation3], 4294966912  ;;  %v143_v0 = vmov 0.2820948   ;;  %v29_v1 = vld [vmem:[#allocation2 + $0x10] sm:$0xff]  ;;  %v25_v2 = vld [vmem:[#allocation2] sm:$0xff] }
   0x7   :  { %33 = vst [vmem:[#allocation5] sm:$0xff] %v143_v0  ;;  %v27_v3 = vld [vmem:[#allocation2 + $0x8] sm:$0xff]  ;;  %v34_v4 = vmul.f32 0.48860252, %v29_v1  ;;  %v32_v5 = vmul.f32 %v29_v1, %v29_v1  ;;  %v41_v6 = vmul.f32 0.48860252, %v25_v2  ;;  %v30_v9 = vmul.f32 %v25_v2, %v25_v2 }
   0x8   :  { %v44_v7 = vmul.f32 0.48860252, %v27_v3  ;;  %v47_v8 = vmul.f32 1.0925485, %v29_v1  ;;  %v31_v10 = vmul.f32 %v27_v3, %v27_v3  ;;  %v55_v11 = vmul.f32 %v27_v3, %v25_v2  ;;  %s144_s0 = smov [#allocation5]   ;;  %s70_s16 = sshll.u32 %s168_s1, 4  ;;  %s71_s16 = int_to_ptr.hbm [resolvable:$true] %s70_s16 }
   0x9   :  { %36 = vst [vmem:[#allocation5 + $0x10] sm:$0xff] %v34_v4  ;;  %v37_v12 = vmul.f32 0.9461747, %v32_v5  ;;  %s68_s13 = sshll.u32 %s144_s0, 4  ;;  %s69_s13 = int_to_ptr.vmem [resolvable:$true] %s68_s13 }
   0xa   :  { %43 = vst [vmem:[#allocation5 + $0x18] sm:$0xff] %v41_v6  ;;  %v48_v13 = vmul.f32 %v47_v8, %v25_v2  ;;  %v51_v14 = vmul.f32 %v47_v8, %v27_v3  ;;  %v54_v15 = vmul.f32 -1.0, %v31_v10  ;;  %v56_v16 = vmul.f32 2.0, %v55_v11 }
   0xb   :  { %v38_v17 = vadd.f32 -0.31539157, %v37_v12  ;;  %46 = vst [vmem:[#allocation5 + $0x8] sm:$0xff] %v44_v7 }
   0xc   :  { %50 = vst [vmem:[#allocation5 + $0x38] sm:$0xff] %v48_v13  ;;  %v57_v18 = vadd.f32 %v54_v15, %v30_v9  ;;  %v61_v19 = vmul.f32 0.54627424, %v56_v16 }
   0xd   :  { %40 = vst [vmem:[#allocation5 + $0x30] sm:$0xff] %v38_v17 }
   0xe   :  { %53 = vst [vmem:[#allocation5 + $0x28] sm:$0xff] %v51_v14  ;;  %v58_v20 = vmul.f32 0.54627424, %v57_v18 }
   0xf   :  { %63 = vst [vmem:[#allocation5 + $0x20] sm:$0xff] %v61_v19 }
  0x10   :  { %60 = vst [vmem:[#allocation5 + $0x40] sm:$0xff] %v58_v20 }
  0x11   :  { %76 = dma.vmem_to_hbm [thread:$0]  %s69_s13, 1152, %s71_s16, [#allocation4], %s141_s11, %s141_s11, %s142_s12  }
  0x12   :  { %138 = dma.done.wait [#allocation4], 1152  }
  0x13   :  { %139 = vsyncadd [#allocation4], 4294966144 }
  0x14   :  { %81 = vsyncpa [#allocation3], 1 }
  0x15   :  { %82 = vsyncpa [#allocation4], 1 }

</bundles_post_ra>
